<compile_context>
chip_gen: v5e
topology: v5e:2x2
jax: 0.10.0
libtpu: 0.0.40
codegen_flags: <defaults>
</compile_context>

<pallas_src>
import functools

import jax
import jax.numpy as jnp
from jax.experimental import pallas as pl
from jax.experimental.pallas import tpu as pltpu


def _round_up(x, m):
    return ((x + m - 1) // m) * m


def _choose_tile(batch, block_batch):
    """Pick the batch tile.

    - Small batches: one tile with minimal (multiple-of-8) padding, e.g. 300 -> 304.
    - Medium batches (fit in one block_batch tile but >= 512 rows): split into two
      even, 256-aligned tiles so the v7x megacore can shard the batch axis.
    - Large batches: march block_batch (multiple of 256) tiles over the batch.
    """
    if batch <= block_batch:
        if batch >= 2 * 256:
            tb = _round_up((batch + 1) // 2, 256)
        else:
            tb = _round_up(batch, 8)
    else:
        tb = block_batch
    padded = _round_up(batch, tb)
    return tb, padded


def mlp_kernel(x_ref, w1_ref, b1_ref, w2_ref, b2_ref, wo_ref, bo_ref, out_ref):
    # hidden layer 1: Linear + ReLU (dropout = identity at inference)
    h = jnp.dot(x_ref[...], w1_ref[...], preferred_element_type=jnp.float32)
    h = jnp.maximum(h + b1_ref[...], 0.0)
    # hidden layer 2: Linear + ReLU
    h = jnp.dot(h, w2_ref[...], preferred_element_type=jnp.float32)
    h = jnp.maximum(h + b2_ref[...], 0.0)
    # output layer: Linear(hidden -> 1), no output activation.
    # A 1-column RHS wastes the MXU; do it as a lane reduction on the VPU/XLU,
    # then store lane-dense as a (1, tb) row (full-width stores instead of a
    # lane-width-1 column).  The (tb,1)->(1,tb) relayout uses the idle XLU slot.
    o = jnp.sum(h * wo_ref[...], axis=-1, keepdims=True)   # (tb, 1)
    out_ref[...] = (o + bo_ref[...]).T                      # (1, tb)


@functools.partial(jax.jit, static_argnames=("block_batch",))
def mlp_forward(x, params, *, block_batch=1024):
    w1, b1, w2, b2, wo, bo = params
    batch, in_dim = x.shape
    h1 = w1.shape[1]
    h2 = w2.shape[1]

    tb, padded = _choose_tile(batch, block_batch)
    if padded != batch:
        x = jnp.pad(x, ((0, padded - batch), (0, 0)))
    num_tiles = padded // tb
    grid = (num_tiles,)

    wo_row = wo.reshape(1, h2)   # (1, h2) for the broadcast lane-reduction

    # x / out tiles march over the batch; all weights/biases stay resident
    # (constant index_map), so they are DMA'd once and reused every grid step.
    in_specs = [
        pl.BlockSpec((tb, in_dim), lambda i: (i, 0)),   # x tile
        pl.BlockSpec((in_dim, h1), lambda i: (0, 0)),   # w1
        pl.BlockSpec((1, h1), lambda i: (0, 0)),        # b1
        pl.BlockSpec((h1, h2), lambda i: (0, 0)),       # w2
        pl.BlockSpec((1, h2), lambda i: (0, 0)),        # b2
        pl.BlockSpec((1, h2), lambda i: (0, 0)),        # wo (row form)
        pl.BlockSpec((1, 1), lambda i: (0, 0)),         # bo
    ]
    # Lane-dense output: one (1, tb) row slab per grid step.
    out_specs = pl.BlockSpec((1, tb), lambda i: (i, 0))

    flops = 2 * padded * (in_dim * h1 + h1 * h2 + h2 * 1)
    bytes_accessed = (
        padded * in_dim * 4 + padded * 4                 # x in + out (f32)
        + (w1.size + w2.size) * 4                        # f32 weights
        + (b1.size + b2.size + wo_row.size + bo.size) * 4
    )

    out = pl.pallas_call(
        mlp_kernel,
        out_shape=jax.ShapeDtypeStruct((num_tiles, tb), jnp.float32),
        grid=grid,
        in_specs=in_specs,
        out_specs=out_specs,
        compiler_params=pltpu.CompilerParams(
            dimension_semantics=("parallel",),
        ),
        cost_estimate=pl.CostEstimate(
            flops=flops, transcendentals=0, bytes_accessed=bytes_accessed
        ),
    )(x, w1, b1, w2, b2, wo_row, bo)

    # (num_tiles, tb) row slabs -> (padded, 1) column -> drop the padded rows.
    return out.reshape(padded, 1)[:batch]


def init_params(key, input_dim, mlp_layer_dims):
    """Deterministic init (Kaiming-uniform-ish like torch.nn.Linear default)."""
    params = []
    dims = [input_dim] + list(mlp_layer_dims) + [1]
    for i in range(len(dims) - 1):
        fan_in, fan_out = dims[i], dims[i + 1]
        key, kw, kb = jax.random.split(key, 3)
        bound = 1.0 / jnp.sqrt(fan_in)
        w = jax.random.uniform(kw, (fan_in, fan_out), jnp.float32, -bound, bound)
        b = jax.random.uniform(kb, (1, fan_out), jnp.float32, -bound, bound)
        params += [w, b]
    return params


def mlp_reference_f32(x, params):
    w1, b1, w2, b2, wo, bo = params
    h = jnp.maximum(x @ w1 + b1, 0.0)
    h = jnp.maximum(h @ w2 + b2, 0.0)
    return h @ wo + bo


if __name__ == "__main__":
    # Shapes consistent with the module: input_dim=32, hidden dims (64, 32), output dim 1.
    input_dim = 32
    mlp_layer_dims = (64, 32)

    key = jax.random.PRNGKey(0)
    params = init_params(key, input_dim, mlp_layer_dims)

    # TODO(synk): training-mode stochastic dropout (pltpu.prng_seed / prng_random_bits)
    # omitted — inference dropout is an identity, matching module.eval() semantics.

    # Case 1: batch=300 -> single 304-row tile (exercises minimal padding path).
    key, kx = jax.random.split(key)
    x = jax.random.normal(kx, (300, input_dim), jnp.float32)
    out = jax.block_until_ready(mlp_forward(x, params))
    assert out.shape == (300, 1)
    ref = mlp_reference_f32(x, params)
    assert jnp.allclose(out, ref, atol=1e-3, rtol=1e-3)

    # Case 2: batch=1200 -> two 768-row tiles (exercises grid > 1 / megacore path).
    key, kx = jax.random.split(key)
    x2 = jax.random.normal(kx, (1200, input_dim), jnp.float32)
    out2 = jax.block_until_ready(mlp_forward(x2, params))
    assert out2.shape == (1200, 1)
    ref2 = mlp_reference_f32(x2, params)
    assert jnp.allclose(out2, ref2, atol=1e-3, rtol=1e-3)

    print("KERNEL_OK")
</pallas_src>

<mosaic_0001>
module attributes {stable_mosaic.version = 11 : i64} {
  func.func @mlp_kernel(%arg0: i32, %arg1: memref<304x32xf32, #tpu.memory_space<vmem>>, %arg2: memref<32x64xf32, #tpu.memory_space<vmem>>, %arg3: memref<1x64xf32, #tpu.memory_space<vmem>>, %arg4: memref<64x32xf32, #tpu.memory_space<vmem>>, %arg5: memref<1x32xf32, #tpu.memory_space<vmem>>, %arg6: memref<1x32xf32, #tpu.memory_space<vmem>>, %arg7: memref<1x1xf32, #tpu.memory_space<vmem>>, %arg8: memref<1x304xf32, #tpu.memory_space<vmem>>) attributes {dimension_semantics = [#tpu.dimension_semantics<parallel>], iteration_bounds = array<i64: 1>, scalar_prefetch = 0 : i64, scratch_operands = 0 : i64, tpu.core_type = #tpu.core_type<tc>, window_params = [{transform_indices = @transform_0, window_bounds = array<i64: 304, 32>}, {pipeline_mode = #tpu.pipeline_mode<synchronous>, transform_indices = @transform_1, window_bounds = array<i64: 32, 64>}, {pipeline_mode = #tpu.pipeline_mode<synchronous>, transform_indices = @transform_2, window_bounds = array<i64: 1, 64>}, {pipeline_mode = #tpu.pipeline_mode<synchronous>, transform_indices = @transform_3, window_bounds = array<i64: 64, 32>}, {pipeline_mode = #tpu.pipeline_mode<synchronous>, transform_indices = @transform_4, window_bounds = array<i64: 1, 32>}, {pipeline_mode = #tpu.pipeline_mode<synchronous>, transform_indices = @transform_5, window_bounds = array<i64: 1, 32>}, {pipeline_mode = #tpu.pipeline_mode<synchronous>, transform_indices = @transform_6, window_bounds = array<i64: 1, 1>}, {transform_indices = @transform_7, window_bounds = array<i64: 1, 304>}]} {
    %c0 = arith.constant 0 : index
    %c0_0 = arith.constant 0 : index
    %0 = vector.load %arg1[%c0, %c0_0] : memref<304x32xf32, #tpu.memory_space<vmem>>, vector<304x32xf32>
    %c0_1 = arith.constant 0 : index
    %c0_2 = arith.constant 0 : index
    %1 = vector.load %arg2[%c0_1, %c0_2] : memref<32x64xf32, #tpu.memory_space<vmem>>, vector<32x64xf32>
    %cst = arith.constant dense<0.000000e+00> : vector<304x64xf32>
    %2 = tpu.matmul %0, %1, %cst {dimension_numbers = #tpu.dot_dimension_numbers<[1], [0], [0], [1], [0, 0, 1, 1], [], []>} : vector<304x32xf32>, vector<32x64xf32>, vector<304x64xf32> -> vector<304x64xf32>
    %c0_3 = arith.constant 0 : index
    %c0_4 = arith.constant 0 : index
    %3 = vector.load %arg3[%c0_3, %c0_4] : memref<1x64xf32, #tpu.memory_space<vmem>>, vector<1x64xf32>
    %4 = vector.broadcast %3 : vector<1x64xf32> to vector<304x64xf32>
    %5 = arith.addf %2, %4 : vector<304x64xf32>
    %cst_5 = arith.constant 0.000000e+00 : f32
    %6 = vector.broadcast %cst_5 : f32 to vector<304x64xf32>
    %7 = arith.maximumf %5, %6 : vector<304x64xf32>
    %c0_6 = arith.constant 0 : index
    %c0_7 = arith.constant 0 : index
    %8 = vector.load %arg4[%c0_6, %c0_7] : memref<64x32xf32, #tpu.memory_space<vmem>>, vector<64x32xf32>
    %cst_8 = arith.constant dense<0.000000e+00> : vector<304x32xf32>
    %9 = tpu.matmul %7, %8, %cst_8 {dimension_numbers = #tpu.dot_dimension_numbers<[1], [0], [0], [1], [0, 0, 1, 1], [], []>} : vector<304x64xf32>, vector<64x32xf32>, vector<304x32xf32> -> vector<304x32xf32>
    %c0_9 = arith.constant 0 : index
    %c0_10 = arith.constant 0 : index
    %10 = vector.load %arg5[%c0_9, %c0_10] : memref<1x32xf32, #tpu.memory_space<vmem>>, vector<1x32xf32>
    %11 = vector.broadcast %10 : vector<1x32xf32> to vector<304x32xf32>
    %12 = arith.addf %9, %11 : vector<304x32xf32>
    %cst_11 = arith.constant 0.000000e+00 : f32
    %13 = vector.broadcast %cst_11 : f32 to vector<304x32xf32>
    %14 = arith.maximumf %12, %13 : vector<304x32xf32>
    %c0_12 = arith.constant 0 : index
    %c0_13 = arith.constant 0 : index
    %15 = vector.load %arg6[%c0_12, %c0_13] : memref<1x32xf32, #tpu.memory_space<vmem>>, vector<1x32xf32>
    %16 = vector.broadcast %15 : vector<1x32xf32> to vector<304x32xf32>
    %17 = arith.mulf %14, %16 : vector<304x32xf32>
    %cst_14 = arith.constant dense<0.000000e+00> : vector<304xf32>
    %18 = vector.multi_reduction <add>, %17, %cst_14 [1] : vector<304x32xf32> to vector<304xf32>
    %19 = vector.shape_cast %18 : vector<304xf32> to vector<304x1xf32>
    %c0_15 = arith.constant 0 : index
    %c0_16 = arith.constant 0 : index
    %20 = vector.load %arg7[%c0_15, %c0_16] : memref<1x1xf32, #tpu.memory_space<vmem>>, vector<1x1xf32>
    %21 = vector.broadcast %20 : vector<1x1xf32> to vector<304x1xf32>
    %22 = arith.addf %19, %21 : vector<304x1xf32>
    %23 = tpu.transpose %22, [1, 0] : vector<304x1xf32> -> vector<1x304xf32>
    %c0_17 = arith.constant 0 : index
    %c0_18 = arith.constant 0 : index
    %24 = vector.load %arg8[%c0_17, %c0_18] : memref<1x304xf32, #tpu.memory_space<vmem>>, vector<1x304xf32>
    tpu.vector_store %arg8[%c0_17, %c0_18], %23 {strides = array<i32>} : memref<1x304xf32, #tpu.memory_space<vmem>>, vector<1x304xf32>,
    return
  }
  func.func @transform_0(%arg0: i32) -> (i32, i32) {
    %c0_i32 = arith.constant 0 : i32
    %c0_i32_0 = arith.constant 0 : i32
    return %arg0, %c0_i32 : i32, i32
  }
  func.func @transform_1(%arg0: i32) -> (i32, i32) {
    %c0_i32 = arith.constant 0 : i32
    %c0_i32_0 = arith.constant 0 : i32
    %c0_i32_1 = arith.constant 0 : i32
    return %c0_i32, %c0_i32_0 : i32, i32
  }
  func.func @transform_2(%arg0: i32) -> (i32, i32) {
    %c0_i32 = arith.constant 0 : i32
    %c0_i32_0 = arith.constant 0 : i32
    %c0_i32_1 = arith.constant 0 : i32
    return %c0_i32, %c0_i32_0 : i32, i32
  }
  func.func @transform_3(%arg0: i32) -> (i32, i32) {
    %c0_i32 = arith.constant 0 : i32
    %c0_i32_0 = arith.constant 0 : i32
    %c0_i32_1 = arith.constant 0 : i32
    return %c0_i32, %c0_i32_0 : i32, i32
  }
  func.func @transform_4(%arg0: i32) -> (i32, i32) {
    %c0_i32 = arith.constant 0 : i32
    %c0_i32_0 = arith.constant 0 : i32
    %c0_i32_1 = arith.constant 0 : i32
    return %c0_i32, %c0_i32_0 : i32, i32
  }
  func.func @transform_5(%arg0: i32) -> (i32, i32) {
    %c0_i32 = arith.constant 0 : i32
    %c0_i32_0 = arith.constant 0 : i32
    %c0_i32_1 = arith.constant 0 : i32
    return %c0_i32, %c0_i32_0 : i32, i32
  }
  func.func @transform_6(%arg0: i32) -> (i32, i32) {
    %c0_i32 = arith.constant 0 : i32
    %c0_i32_0 = arith.constant 0 : i32
    %c0_i32_1 = arith.constant 0 : i32
    return %c0_i32, %c0_i32_0 : i32, i32
  }
  func.func @transform_7(%arg0: i32) -> (i32, i32) {
    %c0_i32 = arith.constant 0 : i32
    %c0_i32_0 = arith.constant 0 : i32
    return %arg0, %c0_i32 : i32, i32
  }
}

</mosaic_0001>

<bundles_post_ra>
// kernel: mlp_forward.1
= control target key start
LH: loop header
LB: loop body
LE: loop exit
PB: predicated region body
PF: predicated region fallthrough
CT: control target
= control target key end

     0   :  { %vm74_vm0 = vcmask 261120   ;;  %vm370_vm1 = vcmask 523264   ;;  %vm953_vm2 = vcmask 1040384   ;;  %vm955_vm3 = vcmask 1041408   ;;  %s1560_s1 = inlined_call_operand.vmem [shape: f32[32,64], index: 1, kind: input, shape index: {}]   ;;  %s1561_s0 = inlined_call_operand.vmem [shape: f32[304,32], index: 0, kind: input, shape index: {}]   ;;  %s1562_s2 = inlined_call_operand.vmem [shape: f32[1,64], index: 2, kind: input, shape index: {}]   ;;  %s1563_s3 = inlined_call_operand.vmem [shape: f32[64,32], index: 3, kind: input, shape index: {}]   ;;  %s1564_s4 = inlined_call_operand.vmem [shape: f32[1,32], index: 4, kind: input, shape index: {}]   ;;  %s1565_s5 = inlined_call_operand.vmem [shape: f32[1,32], index: 5, kind: input, shape index: {}]   ;;  %s1566_s6 = inlined_call_operand.<no memory space> [shape: f32[1,1], index: 6, kind: input, shape index: {}]   ;;  %s1567_s7 = inlined_call_operand.vmem [shape: f32[1,304], index: 7, kind: output, shape index: {}]  }
   0x1   :  { %v69_v0 = vld [vmem:[%s1560_s1 + $0x18] sm:$0xff]  ;;  %v68_v1 = vld [vmem:[%s1560_s1 + $0x10] sm:$0xff]  ;;  %v67_v2 = vld [vmem:[%s1560_s1 + $0x8] sm:$0xff] }
   0x2   :  { %201 = vmatpush.msra.mxu0 %v69_v0  ;;  %1043 = vmatpush.msra.mxu3 %v69_v0  ;;  %v66_v3 = vld [vmem:[%s1560_s1] sm:$0xff]  ;;  %v29_v5 = vld [vmem:[%s1561_s0 + $0x8] sm:$0xff]  ;;  %v30_v6 = vld [vmem:[%s1561_s0 + $0x10] sm:$0xff] }
   0x3   :  { %v28_v4 = vld [vmem:[%s1561_s0] sm:$0xff]  ;;  %v31_v7 = vld [vmem:[%s1561_s0 + $0x18] sm:$0xff]  ;;  %v33_v9 = vld [vmem:[%s1561_s0 + $0x28] sm:$0xff] }
   0x4   :  { %202 = vmatpush.msra.mxu0 %v68_v1  ;;  %1044 = vmatpush.msra.mxu3 %v68_v1  ;;  %v32_v8 = vld [vmem:[%s1561_s0 + $0x20] sm:$0xff]  ;;  %v34_v10 = vld [vmem:[%s1561_s0 + $0x30] sm:$0xff]  ;;  %v35_v11 = vld [vmem:[%s1561_s0 + $0x38] sm:$0xff] }
   0x5   :  { %v36_v12 = vld [vmem:[%s1561_s0 + $0x40] sm:$0xff]  ;;  %v37_v13 = vld [vmem:[%s1561_s0 + $0x48] sm:$0xff]  ;;  %v38_v14 = vld [vmem:[%s1561_s0 + $0x50] sm:$0xff] }
   0x6   :  { %203 = vmatpush.msra.mxu0 %v67_v2  ;;  %1045 = vmatpush.msra.mxu3 %v67_v2  ;;  %v365_v15 = vld [vmem:[%s1563_s3 + $0x38] sm:$0xff]  ;;  %v364_v16 = vld [vmem:[%s1563_s3 + $0x30] sm:$0xff]  ;;  %v363_v17 = vld [vmem:[%s1563_s3 + $0x28] sm:$0xff] }
   0x7   :  { %493 = vmatpush.msra.mxu1 %v365_v15  ;;  %1047 = vmatpush.msra.mxu2 %v365_v15  ;;  %v39_v18 = vld [vmem:[%s1561_s0 + $0x58] sm:$0xff]  ;;  %v362_v19 = vld [vmem:[%s1563_s3 + $0x20] sm:$0xff]  ;;  %v360_v21 = vld [vmem:[%s1563_s3 + $0x10] sm:$0xff] }
   0x8   :  { %204 = vmatpush.msra.mxu0 %v66_v3  ;;  %1046 = vmatpush.msra.mxu3 %v66_v3  ;;  %v361_v20 = vld [vmem:[%s1563_s3 + $0x18] sm:$0xff]  ;;  %v40_v22 = vld [vmem:[%s1561_s0 + $0x60] sm:$0xff]  ;;  %v359_v23 = vld [vmem:[%s1563_s3 + $0x8] sm:$0xff] }
   0x9   :  { %967 = vmatmul.msk.f32.vlgmr.msra.gmra.mxu0 %vm74_vm0, %v28_v4  ;;  %494 = vmatpush.msra.mxu1 %v364_v16  ;;  %v358_v24 = vld [vmem:[%s1563_s3] sm:$0xff]  ;;  %v41_v25 = vld [vmem:[%s1561_s0 + $0x68] sm:$0xff]  ;;  %v42_v26 = vld [vmem:[%s1561_s0 + $0x70] sm:$0xff] }
   0xa   :  { %1048 = vmatpush.msra.mxu2 %v364_v16  ;;  %v43_v27 = vld [vmem:[%s1561_s0 + $0x78] sm:$0xff]  ;;  %v48_v28 = vld [vmem:[%s1561_s0 + $0xa0] sm:$0xff]  ;;  %v49_v34 = vld [vmem:[%s1561_s0 + $0xa8] sm:$0xff] }
   0xb   :  { %495 = vmatpush.msra.mxu1 %v363_v17  ;;  %987 = vmatmul.msk.f32.vlgmr.msra.gmra.mxu3 %vm74_vm0, %v48_v28  ;;  %v1207_v29 = vld [vmem:[%s1562_s2] ss:$0 sm:$0xff]  ;;  %v45_v36 = vld [vmem:[%s1561_s0 + $0x88] sm:$0xff]  ;;  %v50_v39 = vld [vmem:[%s1561_s0 + $0xb0] sm:$0xff] }
   0xc   :  { %1049 = vmatpush.msra.mxu2 %v363_v17  ;;  %v44_v31 = vld [vmem:[%s1561_s0 + $0x80] sm:$0xff]  ;;  %v46_v41 = vld [vmem:[%s1561_s0 + $0x90] sm:$0xff]  ;;  %v51_v44 = vld [vmem:[%s1561_s0 + $0xb8] sm:$0xff] }
   0xd   :  { %496 = vmatpush.msra.mxu1 %v362_v19  ;;  %v47_v46 = vld [vmem:[%s1561_s0 + $0x98] sm:$0xff]  ;;  %v52_v49 = vld [vmem:[%s1561_s0 + $0xc0] sm:$0xff]  ;;  %v53_v53 = vld [vmem:[%s1561_s0 + $0xc8] sm:$0xff] }
   0xe   :  { %1050 = vmatpush.msra.mxu2 %v362_v19  ;;  %v54_v57 = vld [vmem:[%s1561_s0 + $0xd0] sm:$0xff]  ;;  %v55_v61 = vld [vmem:[%s1561_s0 + $0xd8] sm:$0xff]  ;;  %v56_v1 = vld [vmem:[%s1561_s0 + $0xe0] sm:$0xff] }
   0xf   :  { %497 = vmatpush.msra.mxu1 %v361_v20  ;;  %v60_v17 = vld [vmem:[%s1561_s0 + $0x100] sm:$0xff] }
  0x10   :  { %1051 = vmatpush.msra.mxu2 %v361_v20 }
  0x11   :  { %968 = vmatmul.msk.f32.gmra.mxu0 %vm74_vm0, %v29_v5  ;;  %498 = vmatpush.msra.mxu1 %v360_v21  ;;  %v57_v5 = vld [vmem:[%s1561_s0 + $0xe8] sm:$0xff] }
  0x12   :  { %1052 = vmatpush.msra.mxu2 %v360_v21  ;;  %v61_v21 = vld [vmem:[%s1561_s0 + $0x108] sm:$0xff] }
  0x13   :  { %499 = vmatpush.msra.mxu1 %v359_v23  ;;  %988 = vmatmul.msk.f32.gmra.mxu3 %vm74_vm0, %v49_v34  ;;  %v64_v34 = vld [vmem:[%s1561_s0 + $0x120] sm:$0xff] }
  0x14   :  { %1053 = vmatpush.msra.mxu2 %v359_v23 }
  0x15   :  { %500 = vmatpush.msra.mxu1 %v358_v24 }
  0x16   :  { %1054 = vmatpush.msra.mxu2 %v358_v24 }
  0x19   :  { %969 = vmatmul.msk.f32.gmra.mxu0 %vm74_vm0, %v30_v6 }
  0x1b   :  { %989 = vmatmul.msk.f32.gmra.mxu3 %vm74_vm0, %v50_v39 }
  0x21   :  { %970 = vmatmul.msk.f32.gmra.mxu0 %vm74_vm0, %v31_v7 }
  0x23   :  { %990 = vmatmul.msk.f32.gmra.mxu3 %vm74_vm0, %v51_v44 }
  0x29   :  { %971 = vmatmul.msk.f32.gmra.mxu0 %vm74_vm0, %v32_v8 }
  0x2b   :  { %991 = vmatmul.msk.f32.gmra.mxu3 %vm74_vm0, %v52_v49 }
  0x31   :  { %972 = vmatmul.msk.f32.gmra.mxu0 %vm74_vm0, %v33_v9  ;;  %v58_v9 = vld [vmem:[%s1561_s0 + $0xf0] sm:$0xff] }
  0x33   :  { %992 = vmatmul.msk.f32.gmra.mxu3 %vm74_vm0, %v53_v53 }
  0x39   :  { %973 = vmatmul.msk.f32.gmra.mxu0 %vm74_vm0, %v34_v10 }
  0x3b   :  { %993 = vmatmul.msk.f32.gmra.mxu3 %vm74_vm0, %v54_v57 }
  0x41   :  { %974 = vmatmul.msk.f32.gmra.mxu0 %vm74_vm0, %v35_v11 }
  0x43   :  { %994 = vmatmul.msk.f32.gmra.mxu3 %vm74_vm0, %v55_v61 }
  0x49   :  { %975 = vmatmul.msk.f32.gmra.mxu0 %vm74_vm0, %v36_v12 }
  0x4b   :  { %995 = vmatmul.msk.f32.gmra.mxu3 %vm74_vm0, %v56_v1 }
  0x51   :  { %976 = vmatmul.msk.f32.gmra.mxu0 %vm74_vm0, %v37_v13  ;;  %v59_v13 = vld [vmem:[%s1561_s0 + $0xf8] sm:$0xff] }
  0x53   :  { %996 = vmatmul.msk.f32.gmra.mxu3 %vm74_vm0, %v57_v5 }
  0x59   :  { %977 = vmatmul.msk.f32.gmra.mxu0 %vm74_vm0, %v38_v14 }
  0x5b   :  { %997 = vmatmul.msk.f32.gmra.mxu3 %vm74_vm0, %v58_v9 }
  0x61   :  { %978 = vmatmul.msk.f32.gmra.mxu0 %vm74_vm0, %v39_v18 }
  0x63   :  { %998 = vmatmul.msk.f32.gmra.mxu3 %vm74_vm0, %v59_v13 }
  0x69   :  { %979 = vmatmul.msk.f32.gmra.mxu0 %vm74_vm0, %v40_v22 }
  0x6b   :  { %999 = vmatmul.msk.f32.gmra.mxu3 %vm74_vm0, %v60_v17 }
  0x71   :  { %980 = vmatmul.msk.f32.gmra.mxu0 %vm74_vm0, %v41_v25  ;;  %v62_v25 = vld [vmem:[%s1561_s0 + $0x110] sm:$0xff] }
  0x73   :  { %1000 = vmatmul.msk.f32.gmra.mxu3 %vm74_vm0, %v61_v21 }
  0x79   :  { %981 = vmatmul.msk.f32.gmra.mxu0 %vm74_vm0, %v42_v26 }
  0x7b   :  { %1001 = vmatmul.msk.f32.gmra.mxu3 %vm74_vm0, %v62_v25 }
  0x81   :  { %982 = vmatmul.msk.f32.gmra.mxu0 %vm74_vm0, %v43_v27 }
  0x86   :  { %v206_v30 = vpop.f32.mrf.mxu0 }
  0x87   :  { %v207_v32 = vadd.f32 %v1207_v29, %v206_v30  ;;  %v63_v30 = vld [vmem:[%s1561_s0 + $0x118] sm:$0xff] }
  0x88   :  { %1002 = vmatmul.msk.f32.gmra.mxu3 %vm74_vm0, %v63_v30 }
  0x89   :  { %v320_v33 = vmax.f32 %v207_v32, 0.0  ;;  %983 = vmatmul.msk.f32.gmra.mxu0 %vm74_vm0, %v44_v31 }
  0x8b   :  { %1005 = vmatmul.msk.f32.vlgmr.msra.gmra.mxu1 %vm370_vm1, %v320_v33 }
  0x8e   :  { %v209_v35 = vpop.f32.mrf.mxu0 }
  0x8f   :  { %v210_v37 = vadd.f32 %v1207_v29, %v209_v35  ;;  %v1324_v35 = vld [vmem:[%s1564_s4] ss:$0 sm:$0xff] }
  0x90   :  { %1003 = vmatmul.msk.f32.gmra.mxu3 %vm74_vm0, %v64_v34 }
  0x91   :  { %v321_v38 = vmax.f32 %v210_v37, 0.0  ;;  %984 = vmatmul.msk.f32.gmra.mxu0 %vm74_vm0, %v45_v36  ;;  %v266_v36 = vpop.f32.mrf.mxu3 }
  0x93   :  { %1006 = vmatmul.msk.f32.gmra.mxu1 %vm370_vm1, %v321_v38 }
  0x96   :  { %v212_v40 = vpop.f32.mrf.mxu0 }
  0x97   :  { %v213_v42 = vadd.f32 %v1207_v29, %v212_v40 }
  0x99   :  { %v322_v43 = vmax.f32 %v213_v42, 0.0  ;;  %985 = vmatmul.msk.f32.gmra.mxu0 %vm74_vm0, %v46_v41  ;;  %v1331_v42 = vld [vmem:[%s1565_s5] ss:$0 sm:$0xff] }
  0x9b   :  { %1007 = vmatmul.msk.f32.gmra.mxu1 %vm370_vm1, %v322_v43  ;;  %v65_v43 = vld [vmem:[%s1561_s0 + $0x128] sm:$0xff] }
  0x9c   :  { %1004 = vmatmul.msk.f32.gmra.mxu3 %vm74_vm0, %v65_v43 }
  0x9e   :  { %v215_v45 = vpop.f32.mrf.mxu0 }
  0x9f   :  { %v216_v47 = vadd.f32 %v1207_v29, %v215_v45 }
  0xa1   :  { %v323_v48 = vmax.f32 %v216_v47, 0.0  ;;  %986 = vmatmul.msk.f32.gmra.mxu0 %vm74_vm0, %v47_v46  ;;  %v269_v46 = vpop.f32.mrf.mxu3 }
  0xa3   :  { %1008 = vmatmul.msk.f32.gmra.mxu1 %vm370_vm1, %v323_v48 }
  0xa6   :  { %v218_v50 = vpop.f32.mrf.mxu0 }
  0xa7   :  { %v219_v51 = vadd.f32 %v1207_v29, %v218_v50 }
  0xa9   :  { %v324_v52 = vmax.f32 %v219_v51, 0.0 }
  0xab   :  { %1009 = vmatmul.msk.f32.gmra.mxu1 %vm370_vm1, %v324_v52 }
  0xae   :  { %v221_v54 = vpop.f32.mrf.mxu0 }
  0xaf   :  { %v222_v55 = vadd.f32 %v1207_v29, %v221_v54 }
  0xb1   :  { %v325_v56 = vmax.f32 %v222_v55, 0.0  ;;  %v272_v55 = vpop.f32.mrf.mxu3 }
  0xb3   :  { %1010 = vmatmul.msk.f32.gmra.mxu1 %vm370_vm1, %v325_v56 }
  0xb6   :  { %v224_v58 = vpop.f32.mrf.mxu0 }
  0xb7   :  { %v225_v59 = vadd.f32 %v1207_v29, %v224_v58 }
  0xb9   :  { %v326_v60 = vmax.f32 %v225_v59, 0.0 }
  0xbb   :  { %1011 = vmatmul.msk.f32.gmra.mxu1 %vm370_vm1, %v326_v60 }
  0xbe   :  { %v227_v62 = vpop.f32.mrf.mxu0 }
  0xbf   :  { %v228_v63 = vadd.f32 %v1207_v29, %v227_v62 }
  0xc1   :  { %v327_v0 = vmax.f32 %v228_v63, 0.0 }
  0xc3   :  { %1012 = vmatmul.msk.f32.gmra.mxu1 %vm370_vm1, %v327_v0  ;;  %v275_v0 = vpop.f32.mrf.mxu3 }
  0xc6   :  { %v230_v2 = vpop.f32.mrf.mxu0 }
  0xc7   :  { %v231_v3 = vadd.f32 %v1207_v29, %v230_v2 }
  0xc9   :  { %v328_v4 = vmax.f32 %v231_v3, 0.0 }
  0xcb   :  { %1013 = vmatmul.msk.f32.gmra.mxu1 %vm370_vm1, %v328_v4 }
  0xce   :  { %v233_v6 = vpop.f32.mrf.mxu0 }
  0xcf   :  { %v234_v7 = vadd.f32 %v1207_v29, %v233_v6 }
  0xd1   :  { %v329_v8 = vmax.f32 %v234_v7, 0.0 }
  0xd3   :  { %1014 = vmatmul.msk.f32.gmra.mxu1 %vm370_vm1, %v329_v8  ;;  %v267_v8 = vadd.f32 %v1207_v29, %v266_v36 }
  0xd6   :  { %v236_v10 = vpop.f32.mrf.mxu0 }
  0xd7   :  { %v237_v11 = vadd.f32 %v1207_v29, %v236_v10  ;;  %v278_v10 = vpop.f32.mrf.mxu3 }
  0xd9   :  { %v330_v12 = vmax.f32 %v237_v11, 0.0  ;;  %v340_v11 = vmax.f32 %v267_v8, 0.0 }
  0xdb   :  { %1015 = vmatmul.msk.f32.gmra.mxu1 %vm370_vm1, %v330_v12 }
  0xde   :  { %v239_v14 = vpop.f32.mrf.mxu0 }
  0xdf   :  { %v240_v15 = vadd.f32 %v1207_v29, %v239_v14  ;;  %v281_v21 = vpop.f32.mrf.mxu3 }
  0xe1   :  { %v331_v16 = vmax.f32 %v240_v15, 0.0 }
  0xe3   :  { %1016 = vmatmul.msk.f32.gmra.mxu1 %vm370_vm1, %v331_v16  ;;  %v270_v16 = vadd.f32 %v1207_v29, %v269_v46 }
  0xe6   :  { %v242_v18 = vpop.f32.mrf.mxu0 }
  0xe7   :  { %v243_v19 = vadd.f32 %v1207_v29, %v242_v18  ;;  %v341_v18 = vmax.f32 %v270_v16, 0.0 }
  0xe9   :  { %v332_v20 = vmax.f32 %v243_v19, 0.0 }
  0xeb   :  { %1017 = vmatmul.msk.f32.gmra.mxu1 %vm370_vm1, %v332_v20 }
  0xee   :  { %v245_v22 = vpop.f32.mrf.mxu0 }
  0xef   :  { %v246_v23 = vadd.f32 %v1207_v29, %v245_v22 }
  0xf1   :  { %v333_v24 = vmax.f32 %v246_v23, 0.0 }
  0xf3   :  { %1018 = vmatmul.msk.f32.gmra.mxu1 %vm370_vm1, %v333_v24  ;;  %v273_v24 = vadd.f32 %v1207_v29, %v272_v55 }
  0xf6   :  { %v248_v26 = vpop.f32.mrf.mxu0 }
  0xf7   :  { %v249_v27 = vadd.f32 %v1207_v29, %v248_v26  ;;  %v342_v26 = vmax.f32 %v273_v24, 0.0 }
  0xf9   :  { %v334_v28 = vmax.f32 %v249_v27, 0.0 }
  0xfb   :  { %1019 = vmatmul.msk.f32.gmra.mxu1 %vm370_vm1, %v334_v28 }
  0xfe   :  { %v251_v31 = vpop.f32.mrf.mxu0 }
  0xff   :  { %v252_v32 = vadd.f32 %v1207_v29, %v251_v31  ;;  %v284_v31 = vpop.f32.mrf.mxu3 }
 0x101   :  { %v335_v33 = vmax.f32 %v252_v32, 0.0 }
 0x103   :  { %1020 = vmatmul.msk.f32.gmra.mxu1 %vm370_vm1, %v335_v33  ;;  %v276_v33 = vadd.f32 %v1207_v29, %v275_v0 }
 0x105   :  { %v343_v36 = vmax.f32 %v276_v33, 0.0 }
 0x106   :  { %v254_v37 = vpop.f32.mrf.mxu0 }
 0x107   :  { %v255_v38 = vadd.f32 %v1207_v29, %v254_v37  ;;  %v287_v43 = vpop.f32.mrf.mxu3 }
 0x108   :  { %v502_v39 = vpop.f32.mrf.mxu1 }
 0x109   :  { %v336_v40 = vmax.f32 %v255_v38, 0.0  ;;  %v503_v41 = vadd.f32 %v1324_v35, %v502_v39 }
 0x10b   :  { %v616_v44 = vmax.f32 %v503_v41, 0.0  ;;  %1021 = vmatmul.msk.f32.gmra.mxu1 %vm370_vm1, %v336_v40  ;;  %v279_v41 = vadd.f32 %v1207_v29, %v278_v10 }
 0x10d   :  { %v658_v45 = vmul.f32 %v1331_v42, %v616_v44 }
 0x10e   :  { %v257_v47 = vpop.f32.mrf.mxu0 }
 0x10f   :  { %v258_v48 = vadd.f32 %v1207_v29, %v257_v47  ;;  %v696_v49 = vsel %vm74_vm0, %v658_v45, 0.0  ;;  %v344_v45 = vmax.f32 %v279_v41, 0.0 }
 0x110   :  { %v505_v50 = vpop.f32.mrf.mxu1  ;;  %697 = vadd.xlane.f32.xlu0 %v696_v49 }
 0x111   :  { %v337_v51 = vmax.f32 %v258_v48, 0.0  ;;  %v506_v52 = vadd.f32 %v1324_v35, %v505_v50  ;;  %v282_v50 = vadd.f32 %v1207_v29, %v281_v21 }
 0x113   :  { %v617_v53 = vmax.f32 %v506_v52, 0.0  ;;  %1022 = vmatmul.msk.f32.gmra.mxu1 %vm370_vm1, %v337_v51  ;;  %v290_v52 = vpop.f32.mrf.mxu3 }
 0x115   :  { %v659_v54 = vmul.f32 %v1331_v42, %v617_v53  ;;  %v345_v53 = vmax.f32 %v282_v50, 0.0 }
 0x116   :  { %v260_v56 = vpop.f32.mrf.mxu0 }
 0x117   :  { %v261_v57 = vadd.f32 %v1207_v29, %v260_v56  ;;  %v699_v58 = vsel %vm74_vm0, %v659_v54, 0.0 }
 0x118   :  { %v508_v59 = vpop.f32.mrf.mxu1  ;;  %700 = vadd.xlane.f32.xlu0 %v699_v58  ;;  %v285_v58 = vadd.f32 %v1207_v29, %v284_v31 }
 0x119   :  { %v338_v60 = vmax.f32 %v261_v57, 0.0  ;;  %v509_v61 = vadd.f32 %v1324_v35, %v508_v59 }
 0x11b   :  { %v618_v62 = vmax.f32 %v509_v61, 0.0  ;;  %1023 = vmatmul.msk.f32.gmra.mxu1 %vm370_vm1, %v338_v60  ;;  %v346_v60 = vmax.f32 %v285_v58, 0.0 }
 0x11d   :  { %v660_v63 = vmul.f32 %v1331_v42, %v618_v62 }
 0x11e   :  { %v263_v1 = vpop.f32.mrf.mxu0 }
 0x11f   :  { %v264_v2 = vadd.f32 %v1207_v29, %v263_v1  ;;  %v702_v3 = vsel %vm74_vm0, %v660_v63, 0.0  ;;  %v293_v63 = vpop.f32.mrf.mxu3  ;;  %v12_v1 = vstv %s1566_s6 }
 0x120   :  { %v511_v4 = vpop.f32.mrf.mxu1  ;;  %703 = vadd.xlane.f32.xlu1 %v702_v3  ;;  %v288_v3 = vadd.f32 %v1207_v29, %v287_v43  ;;  %13 = vst [vmem:[#allocation2] sm:$0x1] %v12_v1 }
 0x121   :  { %v339_v5 = vmax.f32 %v264_v2, 0.0  ;;  %v512_v6 = vadd.f32 %v1324_v35, %v511_v4 }
 0x123   :  { %v619_v7 = vmax.f32 %v512_v6, 0.0  ;;  %1024 = vmatmul.msk.f32.vlgmr.msra.gmra.mxu2 %vm370_vm1, %v339_v5  ;;  %v347_v5 = vmax.f32 %v288_v3, 0.0 }
 0x125   :  { %v661_v9 = vmul.f32 %v1331_v42, %v619_v7 }
 0x127   :  { %v705_v12 = vsel %vm74_vm0, %v661_v9, 0.0  ;;  %v296_v9 = vpop.f32.mrf.mxu3 }
 0x128   :  { %v514_v13 = vpop.f32.mrf.mxu1  ;;  %706 = vadd.xlane.f32.xlu1 %v705_v12 }
 0x129   :  { %v515_v14 = vadd.f32 %v1324_v35, %v514_v13 }
 0x12b   :  { %v620_v15 = vmax.f32 %v515_v14, 0.0  ;;  %1025 = vmatmul.msk.f32.gmra.mxu2 %vm370_vm1, %v340_v11  ;;  %v291_v11 = vadd.f32 %v1207_v29, %v290_v52 }
 0x12d   :  { %v662_v17 = vmul.f32 %v1331_v42, %v620_v15  ;;  %v348_v13 = vmax.f32 %v291_v11, 0.0 }
 0x12f   :  { %v708_v19 = vsel %vm74_vm0, %v662_v17, 0.0 }
 0x130   :  { %v517_v20 = vpop.f32.mrf.mxu1  ;;  %709 = vadd.xlane.f32.xlu2 %v708_v19  ;;  %v299_v19 = vpop.f32.mrf.mxu3 }
 0x131   :  { %v518_v22 = vadd.f32 %v1324_v35, %v517_v20 }
 0x133   :  { %v621_v23 = vmax.f32 %v518_v22, 0.0  ;;  %1026 = vmatmul.msk.f32.gmra.mxu2 %vm370_vm1, %v341_v18  ;;  %v294_v18 = vadd.f32 %v1207_v29, %v293_v63 }
 0x135   :  { %v663_v25 = vmul.f32 %v1331_v42, %v621_v23  ;;  %v349_v21 = vmax.f32 %v294_v18, 0.0 }
 0x137   :  { %v711_v27 = vsel %vm74_vm0, %v663_v25, 0.0 }
 0x138   :  { %v520_v28 = vpop.f32.mrf.mxu1  ;;  %712 = vadd.xlane.f32.xlu2 %v711_v27 }
 0x139   :  { %v521_v30 = vadd.f32 %v1324_v35, %v520_v28  ;;  %v302_v28 = vpop.f32.mrf.mxu3 }
 0x13b   :  { %v622_v32 = vmax.f32 %v521_v30, 0.0  ;;  %1027 = vmatmul.msk.f32.gmra.mxu2 %vm370_vm1, %v342_v26  ;;  %v297_v26 = vadd.f32 %v1207_v29, %v296_v9 }
 0x13d   :  { %v664_v34 = vmul.f32 %v1331_v42, %v622_v32  ;;  %v350_v30 = vmax.f32 %v297_v26, 0.0 }
 0x13f   :  { %v714_v37 = vsel %vm74_vm0, %v664_v34, 0.0 }
 0x140   :  { %v523_v38 = vpop.f32.mrf.mxu1  ;;  %715 = vadd.xlane.f32.xlu0 %v714_v37 }
 0x141   :  { %v524_v39 = vadd.f32 %v1324_v35, %v523_v38  ;;  %v305_v41 = vpop.f32.mrf.mxu3 }
 0x143   :  { %v623_v40 = vmax.f32 %v524_v39, 0.0  ;;  %1028 = vmatmul.msk.f32.gmra.mxu2 %vm370_vm1, %v343_v36  ;;  %v300_v36 = vadd.f32 %v1207_v29, %v299_v19 }
 0x145   :  { %v665_v44 = vmul.f32 %v1331_v42, %v623_v40  ;;  %v351_v38 = vmax.f32 %v300_v36, 0.0 }
 0x147   :  { %v717_v46 = vsel %vm74_vm0, %v665_v44, 0.0 }
 0x148   :  { %v526_v47 = vpop.f32.mrf.mxu1  ;;  %718 = vadd.xlane.f32.xlu1 %v717_v46 }
 0x149   :  { %v527_v48 = vadd.f32 %v1324_v35, %v526_v47 }
 0x14b   :  { %v624_v49 = vmax.f32 %v527_v48, 0.0  ;;  %1029 = vmatmul.msk.f32.gmra.mxu2 %vm370_vm1, %v344_v45  ;;  %v303_v45 = vadd.f32 %v1207_v29, %v302_v28 }
 0x14d   :  { %v666_v51 = vmul.f32 %v1331_v42, %v624_v49  ;;  %v352_v47 = vmax.f32 %v303_v45, 0.0 }
 0x14f   :  { %v720_v54 = vsel %vm74_vm0, %v666_v51, 0.0  ;;  %v308_v51 = vpop.f32.mrf.mxu3 }
 0x150   :  { %v529_v55 = vpop.f32.mrf.mxu1  ;;  %721 = vadd.xlane.f32.xlu2 %v720_v54 }
 0x151   :  { %v530_v56 = vadd.f32 %v1324_v35, %v529_v55 }
 0x153   :  { %v625_v57 = vmax.f32 %v530_v56, 0.0  ;;  %1030 = vmatmul.msk.f32.gmra.mxu2 %vm370_vm1, %v345_v53  ;;  %v306_v53 = vadd.f32 %v1207_v29, %v305_v41 }
 0x155   :  { %v667_v59 = vmul.f32 %v1331_v42, %v625_v57  ;;  %v353_v55 = vmax.f32 %v306_v53, 0.0 }
 0x157   :  { %v723_v61 = vsel %vm74_vm0, %v667_v59, 0.0 }
 0x158   :  { %v532_v62 = vpop.f32.mrf.mxu1  ;;  %724 = vadd.xlane.f32.xlu0 %v723_v61  ;;  %v311_v61 = vpop.f32.mrf.mxu3 }
 0x159   :  { %v533_v0 = vadd.f32 %v1324_v35, %v532_v62 }
 0x15b   :  { %v626_v2 = vmax.f32 %v533_v0, 0.0  ;;  %1031 = vmatmul.msk.f32.gmra.mxu2 %vm370_vm1, %v346_v60  ;;  %v309_v60 = vadd.f32 %v1207_v29, %v308_v51 }
 0x15d   :  { %v668_v4 = vmul.f32 %v1331_v42, %v626_v2  ;;  %v354_v63 = vmax.f32 %v309_v60, 0.0 }
 0x15f   :  { %v726_v6 = vsel %vm74_vm0, %v668_v4, 0.0  ;;  %v312_v4 = vadd.f32 %v1207_v29, %v311_v61 }
 0x160   :  { %v535_v7 = vpop.f32.mrf.mxu1  ;;  %727 = vadd.xlane.f32.xlu1 %v726_v6  ;;  %v314_v6 = vpop.f32.mrf.mxu3 }
 0x161   :  { %v536_v8 = vadd.f32 %v1324_v35, %v535_v7  ;;  %v355_v7 = vmax.f32 %v312_v4, 0.0  ;;  %v315_v9 = vadd.f32 %v1207_v29, %v314_v6 }
 0x163   :  { %v627_v10 = vmax.f32 %v536_v8, 0.0  ;;  %1032 = vmatmul.msk.f32.gmra.mxu2 %vm370_vm1, %v347_v5  ;;  %v356_v11 = vmax.f32 %v315_v9, 0.0 }
 0x165   :  { %v669_v12 = vmul.f32 %v1331_v42, %v627_v10 }
 0x167   :  { %v729_v14 = vsel %vm74_vm0, %v669_v12, 0.0 }
 0x168   :  { %v538_v15 = vpop.f32.mrf.mxu1  ;;  %730 = vadd.xlane.f32.xlu2 %v729_v14 }
 0x169   :  { %v539_v16 = vadd.f32 %v1324_v35, %v538_v15 }
 0x16b   :  { %v628_v17 = vmax.f32 %v539_v16, 0.0  ;;  %1033 = vmatmul.msk.f32.gmra.mxu2 %vm370_vm1, %v348_v13  ;;  %v317_v13 = vpop.f32.mrf.mxu3 }
 0x16c   :  { %v318_v15 = vadd.f32 %v1207_v29, %v317_v13 }
 0x16d   :  { %v670_v20 = vmul.f32 %v1331_v42, %v628_v17 }
 0x16e   :  { %v357_v19 = vmax.f32 %v318_v15, 0.0 }
 0x16f   :  { %v732_v22 = vsel %vm74_vm0, %v670_v20, 0.0 }
 0x170   :  { %v541_v23 = vpop.f32.mrf.mxu1  ;;  %733 = vadd.xlane.f32.xlu0 %v732_v22 }
 0x171   :  { %v542_v24 = vadd.f32 %v1324_v35, %v541_v23 }
 0x173   :  { %v629_v25 = vmax.f32 %v542_v24, 0.0  ;;  %1034 = vmatmul.msk.f32.gmra.mxu2 %vm370_vm1, %v349_v21 }
 0x175   :  { %v671_v27 = vmul.f32 %v1331_v42, %v629_v25 }
 0x177   :  { %v735_v31 = vsel %vm74_vm0, %v671_v27, 0.0 }
 0x178   :  { %v544_v32 = vpop.f32.mrf.mxu1  ;;  %736 = vadd.xlane.f32.xlu1 %v735_v31 }
 0x179   :  { %v545_v33 = vadd.f32 %v1324_v35, %v544_v32 }
 0x17b   :  { %v630_v34 = vmax.f32 %v545_v33, 0.0  ;;  %1035 = vmatmul.msk.f32.gmra.mxu2 %vm370_vm1, %v350_v30 }
 0x17d   :  { %v672_v37 = vmul.f32 %v1331_v42, %v630_v34 }
 0x17f   :  { %v738_v39 = vsel %vm74_vm0, %v672_v37, 0.0 }
 0x180   :  { %v547_v40 = vpop.f32.mrf.mxu1  ;;  %739 = vadd.xlane.f32.xlu2 %v738_v39 }
 0x181   :  { %v548_v43 = vadd.f32 %v1324_v35, %v547_v40 }
 0x183   :  { %v631_v44 = vmax.f32 %v548_v43, 0.0  ;;  %1036 = vmatmul.msk.f32.gmra.mxu2 %vm370_vm1, %v351_v38 }
 0x185   :  { %v673_v46 = vmul.f32 %v1331_v42, %v631_v44 }
 0x187   :  { %v741_v48 = vsel %vm74_vm0, %v673_v46, 0.0 }
 0x188   :  { %v550_v49 = vpop.f32.mrf.mxu1  ;;  %742 = vadd.xlane.f32.xlu0 %v741_v48 }
 0x189   :  { %v551_v50 = vadd.f32 %v1324_v35, %v550_v49 }
 0x18b   :  { %v632_v52 = vmax.f32 %v551_v50, 0.0  ;;  %1037 = vmatmul.msk.f32.gmra.mxu2 %vm370_vm1, %v352_v47 }
 0x18d   :  { %v674_v54 = vmul.f32 %v1331_v42, %v632_v52 }
 0x18f   :  { %v744_v56 = vsel %vm74_vm0, %v674_v54, 0.0 }
 0x190   :  { %v553_v57 = vpop.f32.mrf.mxu1  ;;  %745 = vadd.xlane.f32.xlu1 %v744_v56 }
 0x191   :  { %v554_v58 = vadd.f32 %v1324_v35, %v553_v57 }
 0x193   :  { %v633_v59 = vmax.f32 %v554_v58, 0.0  ;;  %1038 = vmatmul.msk.f32.gmra.mxu2 %vm370_vm1, %v353_v55 }
 0x195   :  { %v675_v62 = vmul.f32 %v1331_v42, %v633_v59 }
 0x197   :  { %v747_v0 = vsel %vm74_vm0, %v675_v62, 0.0 }
 0x198   :  { %v556_v1 = vpop.f32.mrf.mxu1  ;;  %748 = vadd.xlane.f32.xlu2 %v747_v0 }
 0x199   :  { %v557_v2 = vadd.f32 %v1324_v35, %v556_v1 }
 0x19b   :  { %v634_v3 = vmax.f32 %v557_v2, 0.0  ;;  %1039 = vmatmul.msk.f32.gmra.mxu2 %vm370_vm1, %v354_v63 }
 0x19d   :  { %v676_v5 = vmul.f32 %v1331_v42, %v634_v3 }
 0x19f   :  { %v750_v8 = vsel %vm74_vm0, %v676_v5, 0.0 }
 0x1a0   :  { %751 = vadd.xlane.f32.xlu0 %v750_v8 }
 0x1a3   :  { %1040 = vmatmul.msk.f32.gmra.mxu2 %vm370_vm1, %v355_v7 }
 0x1a6   :  { %v559_v10 = vpop.f32.mrf.mxu2 }
 0x1a7   :  { %v560_v12 = vadd.f32 %v1324_v35, %v559_v10 }
 0x1a9   :  { %v635_v14 = vmax.f32 %v560_v12, 0.0 }
 0x1ab   :  { %1041 = vmatmul.msk.f32.gmra.mxu2 %vm370_vm1, %v356_v11  ;;  %v677_v16 = vmul.f32 %v1331_v42, %v635_v14 }
 0x1ad   :  { %v753_v17 = vsel %vm74_vm0, %v677_v16, 0.0 }
 0x1ae   :  { %v562_v18 = vpop.f32.mrf.mxu2  ;;  %754 = vadd.xlane.f32.xlu1 %v753_v17 }
 0x1af   :  { %v563_v20 = vadd.f32 %v1324_v35, %v562_v18 }
 0x1b1   :  { %v636_v21 = vmax.f32 %v563_v20, 0.0 }
 0x1b3   :  { %1042 = vmatmul.msk.f32.gmra.mxu2 %vm370_vm1, %v357_v19  ;;  %v678_v22 = vmul.f32 %v1331_v42, %v636_v21 }
 0x1b5   :  { %v756_v23 = vsel %vm74_vm0, %v678_v22, 0.0 }
 0x1b6   :  { %v565_v24 = vpop.f32.mrf.mxu2  ;;  %757 = vadd.xlane.f32.xlu2 %v756_v23 }
 0x1b7   :  { %v566_v29 = vadd.f32 %v1324_v35, %v565_v24 }
 0x1b9   :  { %v637_v25 = vmax.f32 %v566_v29, 0.0 }
 0x1bb   :  { %v679_v26 = vmul.f32 %v1331_v42, %v637_v25 }
 0x1bd   :  { %v759_v27 = vsel %vm74_vm0, %v679_v26, 0.0 }
 0x1be   :  { %v568_v28 = vpop.f32.mrf.mxu2  ;;  %760 = vadd.xlane.f32.xlu0 %v759_v27 }
 0x1bf   :  { %v569_v30 = vadd.f32 %v1324_v35, %v568_v28 }
 0x1c1   :  { %v638_v31 = vmax.f32 %v569_v30, 0.0 }
 0x1c3   :  { %v680_v32 = vmul.f32 %v1331_v42, %v638_v31 }
 0x1c5   :  { %v762_v33 = vsel %vm74_vm0, %v680_v32, 0.0 }
 0x1c6   :  { %v571_v34 = vpop.f32.mrf.mxu2  ;;  %763 = vadd.xlane.f32.xlu1 %v762_v33 }
 0x1c7   :  { %v572_v36 = vadd.f32 %v1324_v35, %v571_v34 }
 0x1c9   :  { %v639_v37 = vmax.f32 %v572_v36, 0.0 }
 0x1cb   :  { %v681_v38 = vmul.f32 %v1331_v42, %v639_v37 }
 0x1cd   :  { %v765_v39 = vsel %vm74_vm0, %v681_v38, 0.0 }
 0x1ce   :  { %v574_v40 = vpop.f32.mrf.mxu2  ;;  %766 = vadd.xlane.f32.xlu2 %v765_v39 }
 0x1cf   :  { %v575_v41 = vadd.f32 %v1324_v35, %v574_v40  ;;  %v704_v40 = vpop.xlane.xlu1 %703 }
 0x1d1   :  { %v640_v43 = vmax.f32 %v575_v41, 0.0 }
 0x1d3   :  { %v682_v44 = vmul.f32 %v1331_v42, %v640_v43 }
 0x1d5   :  { %v768_v45 = vsel %vm74_vm0, %v682_v44, 0.0 }
 0x1d6   :  { %v577_v46 = vpop.f32.mrf.mxu2  ;;  %769 = vadd.xlane.f32.xlu0 %v768_v45 }
 0x1d7   :  { %v578_v47 = vadd.f32 %v1324_v35, %v577_v46  ;;  %v698_v46 = vpop.xlane.xlu0 %697 }
 0x1d9   :  { %v641_v48 = vmax.f32 %v578_v47, 0.0  ;;  %v710_v47 = vpop.xlane.xlu2 %709 }
 0x1db   :  { %v683_v49 = vmul.f32 %v1331_v42, %v641_v48 }
 0x1dd   :  { %v771_v50 = vsel %vm74_vm0, %v683_v49, 0.0 }
 0x1de   :  { %v580_v51 = vpop.f32.mrf.mxu2  ;;  %772 = vadd.xlane.f32.xlu1 %v771_v50  ;;  %v707_v50 = vpop.xlane.xlu1 %706 }
 0x1df   :  { %v581_v52 = vadd.f32 %v1324_v35, %v580_v51 }
 0x1e1   :  { %v642_v53 = vmax.f32 %v581_v52, 0.0 }
 0x1e3   :  { %v684_v54 = vmul.f32 %v1331_v42, %v642_v53  ;;  %v701_v53 = vpop.xlane.xlu0 %700 }
 0x1e5   :  { %v774_v55 = vsel %vm74_vm0, %v684_v54, 0.0  ;;  %v713_v54 = vpop.xlane.xlu2 %712 }
 0x1e6   :  { %v583_v56 = vpop.f32.mrf.mxu2  ;;  %775 = vadd.xlane.f32.xlu2 %v774_v55  ;;  %v719_v55 = vpop.xlane.xlu1 %718 }
 0x1e7   :  { %v584_v57 = vadd.f32 %v1324_v35, %v583_v56 }
 0x1e9   :  { %v643_v58 = vmax.f32 %v584_v57, 0.0 }
 0x1eb   :  { %v685_v59 = vmul.f32 %v1331_v42, %v643_v58  ;;  %v716_v56 = vpop.xlane.xlu0 %715 }
 0x1ed   :  { %v777_v60 = vsel %vm74_vm0, %v685_v59, 0.0  ;;  %v722_v57 = vpop.xlane.xlu2 %721  ;;  %v1498_v59 = vld [vmem:[#allocation2] ss:$0 sm:$0xff] }
 0x1ee   :  { %v586_v61 = vpop.f32.mrf.mxu2  ;;  %778 = vadd.xlane.f32.xlu0 %v777_v60  ;;  %v1496_v58 = vpop.xlane.xlu1 %727 }
 0x1ef   :  { %v587_v62 = vadd.f32 %v1324_v35, %v586_v61 }
 0x1f1   :  { %v644_v63 = vmax.f32 %v587_v62, 0.0 }
 0x1f3   :  { %v686_v0 = vmul.f32 %v1331_v42, %v644_v63  ;;  %v1500_v60 = vpop.xlane.xlu0 %724 }
 0x1f5   :  { %v780_v1 = vsel %vm74_vm0, %v686_v0, 0.0  ;;  %v1502_v61 = vpop.xlane.xlu2 %730 }
 0x1f6   :  { %v589_v2 = vpop.f32.mrf.mxu2  ;;  %781 = vadd.xlane.f32.xlu1 %v780_v1  ;;  %v815_v1 = vadd.f32 %v1498_v59, %v701_v53 }
 0x1f7   :  { %v590_v3 = vadd.f32 %v1324_v35, %v589_v2 }
 0x1f9   :  { %v645_v4 = vmax.f32 %v590_v3, 0.0 }
 0x1fb   :  { %v687_v5 = vmul.f32 %v1331_v42, %v645_v4  ;;  %v1507_v62 = vpop.xlane.xlu0 %733 }
 0x1fc   :  { %v826_v53 = vadd.f32 %v1498_v59, %v1507_v62 }
 0x1fd   :  { %v783_v6 = vsel %vm74_vm0, %v687_v5, 0.0  ;;  %v1509_v63 = vpop.xlane.xlu2 %739  ;;  %v816_v5 = vadd.f32 %v1498_v59, %v704_v40  ;;  %v823_v40 = vadd.f32 %v1498_v59, %v1500_v60 }
 0x1fe   :  { %v592_v7 = vpop.f32.mrf.mxu2  ;;  %784 = vadd.xlane.f32.xlu2 %v783_v6 }
 0x1ff   :  { %v593_v8 = vadd.f32 %v1324_v35, %v592_v7 }
 0x201   :  { %v646_v9 = vmax.f32 %v593_v8, 0.0 }
 0x203   :  { %v688_v10 = vmul.f32 %v1331_v42, %v646_v9  ;;  %v1513_v3 = vpop.xlane.xlu0 %742  ;;  %v817_v9 = vadd.f32 %v1498_v59, %v707_v50 }
 0x204   :  { %v829_v60 = vadd.f32 %v1498_v59, %v1513_v3 }
 0x205   :  { %v786_v11 = vsel %vm74_vm0, %v688_v10, 0.0 }
 0x206   :  { %v595_v12 = vpop.f32.mrf.mxu2  ;;  %787 = vadd.xlane.f32.xlu0 %v786_v11 }
 0x207   :  { %v596_v13 = vadd.f32 %v1324_v35, %v595_v12 }
 0x209   :  { %v647_v14 = vmax.f32 %v596_v13, 0.0 }
 0x20b   :  { %v689_v15 = vmul.f32 %v1331_v42, %v647_v14  ;;  %v749_v4 = vpop.xlane.xlu2 %748  ;;  %v818_v14 = vadd.f32 %v1498_v59, %v710_v47 }
 0x20c   :  { %v831_v6 = vadd.f32 %v1498_v59, %v749_v4 }
 0x20d   :  { %v789_v16 = vsel %vm74_vm0, %v689_v15, 0.0 }
 0x20e   :  { %v598_v17 = vpop.f32.mrf.mxu2  ;;  %790 = vadd.xlane.f32.xlu1 %v789_v16 }
 0x20f   :  { %v599_v18 = vadd.f32 %v1324_v35, %v598_v17 }
 0x211   :  { %v648_v19 = vmax.f32 %v599_v18, 0.0 }
 0x213   :  { %v690_v20 = vmul.f32 %v1331_v42, %v648_v19  ;;  %v752_v7 = vpop.xlane.xlu0 %751  ;;  %v819_v19 = vadd.f32 %v1498_v59, %v713_v54 }
 0x214   :  { %v832_v10 = vadd.f32 %v1498_v59, %v752_v7 }
 0x215   :  { %v792_v21 = vsel %vm74_vm0, %v690_v20, 0.0 }
 0x216   :  { %v601_v22 = vpop.f32.mrf.mxu2  ;;  %793 = vadd.xlane.f32.xlu2 %v792_v21 }
 0x217   :  { %v602_v23 = vadd.f32 %v1324_v35, %v601_v22 }
 0x219   :  { %v649_v24 = vmax.f32 %v602_v23, 0.0 }
 0x21b   :  { %v691_v29 = vmul.f32 %v1331_v42, %v649_v24  ;;  %v820_v24 = vadd.f32 %v1498_v59, %v716_v56 }
 0x21d   :  { %v795_v25 = vsel %vm74_vm0, %v691_v29, 0.0 }
 0x21e   :  { %v604_v26 = vpop.f32.mrf.mxu2  ;;  %796 = vadd.xlane.f32.xlu0 %v795_v25 }
 0x21f   :  { %v605_v27 = vadd.f32 %v1324_v35, %v604_v26 }
 0x221   :  { %v650_v28 = vmax.f32 %v605_v27, 0.0 }
 0x223   :  { %v692_v30 = vmul.f32 %v1331_v42, %v650_v28 }
 0x225   :  { %v798_v31 = vsel %vm74_vm0, %v692_v30, 0.0  ;;  %v821_v30 = vadd.f32 %v1498_v59, %v719_v55 }
 0x226   :  { %v607_v32 = vpop.f32.mrf.mxu2  ;;  %799 = vadd.xlane.f32.xlu1 %v798_v31 }
 0x227   :  { %v608_v33 = vadd.f32 %v1324_v35, %v607_v32 }
 0x229   :  { %v651_v34 = vmax.f32 %v608_v33, 0.0  ;;  %v758_v8 = vpop.xlane.xlu2 %757 }
 0x22a   :  { %v834_v20 = vadd.f32 %v1498_v59, %v758_v8 }
 0x22b   :  { %v693_v36 = vmul.f32 %v1331_v42, %v651_v34 }
 0x22d   :  { %v801_v37 = vsel %vm74_vm0, %v693_v36, 0.0  ;;  %v822_v36 = vadd.f32 %v1498_v59, %v722_v57  ;;  %v828_v57 = vadd.f32 %v1498_v59, %v1509_v63 }
 0x22e   :  { %v610_v38 = vpop.f32.mrf.mxu2  ;;  %802 = vadd.xlane.f32.xlu2 %v801_v37 }
 0x22f   :  { %v611_v39 = vadd.f32 %v1324_v35, %v610_v38 }
 0x231   :  { %v652_v41 = vmax.f32 %v611_v39, 0.0  ;;  %v761_v12 = vpop.xlane.xlu0 %760 }
 0x232   :  { %v835_v29 = vadd.f32 %v1498_v59, %v761_v12 }
 0x233   :  { %v694_v43 = vmul.f32 %v1331_v42, %v652_v41 }
 0x235   :  { %v804_v44 = vsel %vm74_vm0, %v694_v43, 0.0 }
 0x236   :  { %v613_v45 = vpop.f32.mrf.mxu2  ;;  %805 = vadd.xlane.f32.xlu0 %v804_v44 }
 0x237   :  { %v614_v48 = vadd.f32 %v1324_v35, %v613_v45  ;;  %v1504_v35 = vpop.xlane.xlu1 %736  ;;  %v824_v45 = vadd.f32 %v1498_v59, %v1496_v58 }
 0x238   :  { %v827_v55 = vadd.f32 %v1498_v59, %v1504_v35 }
 0x239   :  { %v653_v49 = vmax.f32 %v614_v48, 0.0 }
 0x23b   :  { %v695_v51 = vmul.f32 %v1331_v42, %v653_v49  ;;  %v814_v42 = vadd.f32 %v1498_v59, %v698_v46  ;;  %v825_v49 = vadd.f32 %v1498_v59, %v1502_v61 }
 0x23d   :  { %v807_v52 = vsel %vm74_vm0, %v695_v51, 0.0 }
 0x23e   :  { %808 = vadd.xlane.f32.xlu1 %v807_v52 }
 0x23f   :  { %v746_v0 = vpop.xlane.xlu1 %745 }
 0x240   :  { %v830_v2 = vadd.f32 %v1498_v59, %v746_v0  ;;  %v958_v0 = vlaneseq }
 0x241   :  { %v767_v13 = vpop.xlane.xlu2 %766 }
 0x242   :  { %v837_v37 = vadd.f32 %v1498_v59, %v767_v13  ;;  %vm960_vm4 = vcmp.lt.s32.totalorder %v958_v0, 304 }
 0x247   :  { %v755_v11 = vpop.xlane.xlu1 %754 }
 0x248   :  { %v833_v15 = vadd.f32 %v1498_v59, %v755_v11 }
 0x249   :  { %v770_v17 = vpop.xlane.xlu0 %769 }
 0x24a   :  { %v838_v41 = vadd.f32 %v1498_v59, %v770_v17 }
 0x24f   :  { %v764_v16 = vpop.xlane.xlu1 %763 }
 0x250   :  { %v836_v31 = vadd.f32 %v1498_v59, %v764_v16 }
 0x257   :  { %852 = vxpose.xlu2.b32.start [1/16] (narrow) %v814_v42, 8  ;;  %v773_v21 = vpop.xlane.xlu1 %772 }
 0x258   :  { %v839_v46 = vadd.f32 %v1498_v59, %v773_v21 }
 0x259   :  { %v776_v18 = vpop.xlane.xlu2 %775 }
 0x25a   :  { %v840_v50 = vadd.f32 %v1498_v59, %v776_v18 }
 0x25f   :  { %884 = vxpose.xlu0.b32.start [1/16] (narrow) %v830_v2, 8  ;;  %853 = vxpose.xlu2.b32.cont [2/16] (narrow) %v815_v1, 8 }
 0x261   :  { %v779_v22 = vpop.xlane.xlu0 %778 }
 0x262   :  { %v841_v54 = vadd.f32 %v1498_v59, %v779_v22 }
 0x267   :  { %885 = vxpose.xlu0.b32.cont [2/16] (narrow) %v831_v6, 8  ;;  %854 = vxpose.xlu2.b32.cont [3/16] (narrow) %v816_v5, 8 }
 0x269   :  { %v782_v25 = vpop.xlane.xlu1 %781 }
 0x26a   :  { %v842_v56 = vadd.f32 %v1498_v59, %v782_v25 }
 0x26f   :  { %855 = vxpose.xlu2.b32.cont [4/16] (narrow) %v817_v9, 8  ;;  %886 = vxpose.xlu0.b32.cont [3/16] (narrow) %v832_v10, 8 }
 0x271   :  { %v785_v23 = vpop.xlane.xlu2 %784 }
 0x272   :  { %v843_v58 = vadd.f32 %v1498_v59, %v785_v23 }
 0x277   :  { %856 = vxpose.xlu2.b32.cont [5/16] (narrow) %v818_v14, 8  ;;  %887 = vxpose.xlu0.b32.cont [4/16] (narrow) %v833_v15, 8 }
 0x279   :  { %v788_v26 = vpop.xlane.xlu0 %787 }
 0x27a   :  { %v844_v61 = vadd.f32 %v1498_v59, %v788_v26 }
 0x27f   :  { %857 = vxpose.xlu2.b32.cont [6/16] (narrow) %v819_v19, 8  ;;  %888 = vxpose.xlu0.b32.cont [5/16] (narrow) %v834_v20, 8 }
 0x281   :  { %v791_v32 = vpop.xlane.xlu1 %790 }
 0x282   :  { %v845_v35 = vadd.f32 %v1498_v59, %v791_v32 }
 0x287   :  { %858 = vxpose.xlu2.b32.cont [7/16] (narrow) %v820_v24, 8  ;;  %889 = vxpose.xlu0.b32.cont [6/16] (narrow) %v835_v29, 8 }
 0x289   :  { %v794_v27 = vpop.xlane.xlu2 %793 }
 0x28a   :  { %v846_v28 = vadd.f32 %v1498_v59, %v794_v27 }
 0x28c   :  { %916 = vxpose.xlu1.b32.start [1/6] (short) (narrow) %v846_v28, 8 }
 0x28f   :  { %859 = vxpose.xlu2.b32.cont [8/16] (narrow) %v821_v30, 8  ;;  %890 = vxpose.xlu0.b32.cont [7/16] (narrow) %v836_v31, 8 }
 0x291   :  { %v797_v33 = vpop.xlane.xlu0 %796 }
 0x292   :  { %v847_v34 = vadd.f32 %v1498_v59, %v797_v33 }
 0x294   :  { %917 = vxpose.xlu1.b32.cont [2/6] (short) (narrow) %v847_v34, 8 }
 0x297   :  { %860 = vxpose.xlu2.b32.cont [9/16] (narrow) %v822_v36, 8  ;;  %891 = vxpose.xlu0.b32.cont [8/16] (narrow) %v837_v37, 8 }
 0x299   :  { %v800_v38 = vpop.xlane.xlu1 %799 }
 0x29a   :  { %v848_v39 = vadd.f32 %v1498_v59, %v800_v38 }
 0x29c   :  { %918 = vxpose.xlu1.b32.cont [3/6] (short) (narrow) %v848_v39, 8 }
 0x29f   :  { %861 = vxpose.xlu2.b32.cont [10/16] (narrow) %v823_v40, 8  ;;  %892 = vxpose.xlu0.b32.cont [9/16] (narrow) %v838_v41, 8 }
 0x2a1   :  { %v803_v43 = vpop.xlane.xlu2 %802 }
 0x2a2   :  { %v849_v44 = vadd.f32 %v1498_v59, %v803_v43 }
 0x2a4   :  { %919 = vxpose.xlu1.b32.cont [4/6] (short) (narrow) %v849_v44, 8 }
 0x2a7   :  { %862 = vxpose.xlu2.b32.cont [11/16] (narrow) %v824_v45, 8  ;;  %893 = vxpose.xlu0.b32.cont [10/16] (narrow) %v839_v46, 8 }
 0x2a9   :  { %v806_v47 = vpop.xlane.xlu0 %805 }
 0x2aa   :  { %v850_v48 = vadd.f32 %v1498_v59, %v806_v47 }
 0x2ac   :  { %920 = vxpose.xlu1.b32.cont [5/6] (short) (narrow) %v850_v48, 8 }
 0x2af   :  { %863 = vxpose.xlu2.b32.cont [12/16] (narrow) %v825_v49, 8  ;;  %894 = vxpose.xlu0.b32.cont [11/16] (narrow) %v840_v50, 8 }
 0x2b1   :  { %v809_v51 = vpop.xlane.xlu1 %808 }
 0x2b2   :  { %v851_v52 = vadd.f32 %v1498_v59, %v809_v51 }
 0x2b4   :  { %921 = vxpose.xlu1.b32.end [6/6] (short) (narrow) %v851_v52, 8 }
 0x2b7   :  { %864 = vxpose.xlu2.b32.cont [13/16] (narrow) %v826_v53, 8  ;;  %895 = vxpose.xlu0.b32.cont [12/16] (narrow) %v841_v54, 8 }
 0x2bf   :  { %865 = vxpose.xlu2.b32.cont [14/16] (narrow) %v827_v55, 8  ;;  %896 = vxpose.xlu0.b32.cont [13/16] (narrow) %v842_v56, 8 }
 0x2c7   :  { %866 = vxpose.xlu2.b32.cont [15/16] (narrow) %v828_v57, 8  ;;  %897 = vxpose.xlu0.b32.cont [14/16] (narrow) %v843_v58, 8 }
 0x2cf   :  { %867 = vxpose.xlu2.b32.end [16/16] (narrow) %v829_v60, 8  ;;  %898 = vxpose.xlu0.b32.cont [15/16] (narrow) %v844_v61, 8 }
 0x2d7   :  { %899 = vxpose.xlu0.b32.end [16/16] (narrow) %v845_v35, 8 }
 0x2f0   :  { %v868_v1 = vpop.trf.xlu2 }
 0x303   :  { %v900_v42 = vpop.trf.xlu0 }
 0x304   :  { %v951_v62 = vrot.slane %v900_v42, 7 }
 0x306   :  { %v954_v2 = vsel %vm953_vm2, %v868_v1, %v951_v62 }
 0x330   :  { %v932_v63 = vpop.trf.xlu1 }
 0x331   :  { %v952_v4 = vrot.slane %v932_v63, 6 }
 0x333   :  { %v956_v5 = vsel %vm955_vm3, %v954_v2, %v952_v4 }
 0x334   :  { %962 = vst.msk [vmem:[%s1567_s7] sm:$0x7] %vm960_vm4, %v956_v5 }

</bundles_post_ra>
